<compile_context>
chip_gen: v6e
topology: v6e:2x2x1
jax: 0.10.0
libtpu: 0.0.40
codegen_flags: <defaults>
</compile_context>

<pallas_src>
import jax
import jax.numpy as jnp
from jax.experimental import pallas as pl
from jax.experimental.pallas import tpu as pltpu

INPUT_SZ = 3
HIDDEN = 256
ACTION_SPACE = 1      # layer-3 lane-reduction below assumes action_space == 1
OUT_LANES = 128       # lane-dense padded output width (>= ACTION_SPACE)


def _round_up(x, m):
    return (x + m - 1) // m * m


def policy_kernel(x_ref, w1_ref, b1_ref, w2_ref, b2_ref, w3_ref, b3_ref, o_ref):
    x = x_ref[...]                                   # [TM, 3]  f32
    w1 = w1_ref[...]                                 # [3, 256]

    # Layer 1: Linear(3, 256) + ReLU on the VPU (3 broadcast-FMAs).
    h1 = (x[:, 0:1] * w1[0:1, :]
          + x[:, 1:2] * w1[1:2, :]
          + x[:, 2:3] * w1[2:3, :]
          + b1_ref[...])                             # [TM, 256]
    h1 = jnp.maximum(h1, 0.0)

    # Layer 2: Linear(256, 256) + ReLU — the only real MXU matmul.
    h2 = jnp.dot(h1, w2_ref[...], preferred_element_type=jnp.float32)
    h2 = jnp.maximum(h2 + b2_ref[...], 0.0)          # [TM, 256]

    # Layer 3: Linear(256, 1) as multiply + cross-lane reduce (N=1 on the MXU
    # wastes all but one result lane), then tanh, with /0.5 folded into *2.0.
    y = jnp.sum(h2 * w3_ref[...], axis=-1, keepdims=True) + b3_ref[0, 0]
    y = jnp.tanh(y) * 2.0                            # [TM, 1]

    # Lane-dense, unmasked store into the padded 128-lane output block;
    # the wrapper slices [:, :ACTION_SPACE].
    o_ref[...] = jnp.broadcast_to(y, o_ref.shape).astype(o_ref.dtype)


def policy_forward(state, params):
    """state: [B, INPUT_SZ] float32; params: dict of w1,b1,w2,b2,w3,b3."""
    B = state.shape[0]
    w1, b1 = params["w1"], params["b1"]   # [3, 256],   [1, 256]
    w2, b2 = params["w2"], params["b2"]   # [256, 256], [1, 256]
    w3, b3 = params["w3"], params["b3"]   # [256, 1],   [1, 1]

    w3_row = w3.T                         # [1, 256] row for the lane reduction
    b3_scalar = b3.reshape(1, 1)          # scalar, lives in SMEM

    # Pad the batch to a multiple of the row tile (>= 8 sublanes for f32).
    tm = min(256, _round_up(max(B, 1), 8))
    b_pad = _round_up(B, tm)
    if b_pad != B:
        state = jnp.pad(state, ((0, b_pad - B), (0, 0)))

    resident = lambda shape: pl.BlockSpec(shape, lambda i: (0, 0))

    out = pl.pallas_call(
        policy_kernel,
        out_shape=jax.ShapeDtypeStruct((b_pad, OUT_LANES), jnp.float32),
        grid=(b_pad // tm,),
        in_specs=[
            pl.BlockSpec((tm, INPUT_SZ), lambda i: (i, 0)),      # state tile
            resident((INPUT_SZ, HIDDEN)),                        # w1 (resident)
            resident((1, HIDDEN)),                               # b1
            resident((HIDDEN, HIDDEN)),                          # w2
            resident((1, HIDDEN)),                               # b2
            resident((ACTION_SPACE, HIDDEN)),                    # w3 row
            pl.BlockSpec(memory_space=pltpu.MemorySpace.SMEM),   # b3 scalar
        ],
        out_specs=pl.BlockSpec((tm, OUT_LANES), lambda i: (i, 0)),
        compiler_params=pltpu.CompilerParams(
            dimension_semantics=("parallel",),   # lets v7x use both TCs
        ),
    )(state, w1, b1, w2, b2, w3_row, b3_scalar)

    return out[:B, :ACTION_SPACE]


def init_params(key):
    """Deterministic init matching PyTorch nn.Linear default:
    U(-1/sqrt(fan_in), 1/sqrt(fan_in)) for both weight and bias.
    Weights stored transposed as [in, out]."""
    ks = jax.random.split(key, 6)

    def linear(kw, kb, fan_in, fan_out):
        bound = 1.0 / jnp.sqrt(fan_in)
        w = jax.random.uniform(kw, (fan_in, fan_out), jnp.float32, -bound, bound)
        b = jax.random.uniform(kb, (1, fan_out), jnp.float32, -bound, bound)
        return w, b

    w1, b1 = linear(ks[0], ks[1], INPUT_SZ, HIDDEN)
    w2, b2 = linear(ks[2], ks[3], HIDDEN, HIDDEN)
    w3, b3 = linear(ks[4], ks[5], HIDDEN, ACTION_SPACE)
    return {"w1": w1, "b1": b1, "w2": w2, "b2": b2, "w3": w3, "b3": b3}


if __name__ == "__main__":
    key = jax.random.PRNGKey(0)
    k_params, k_state = jax.random.split(key)

    params = init_params(k_params)

    def ref(x, p):
        # Layers 1/3 in exact f32 (matches the kernel's VPU math); layer 2
        # uses the same default-precision MXU dot path as the kernel.
        h1 = jnp.maximum(jnp.dot(x, p["w1"], precision="highest") + p["b1"], 0.0)
        h2 = jnp.maximum(jnp.dot(h1, p["w2"]) + p["b2"], 0.0)
        y = jnp.dot(h2, p["w3"], precision="highest") + p["b3"]
        return jnp.tanh(y) / 0.5

    # Batch of 8 (sublane-aligned).
    state = jax.random.normal(k_state, (8, INPUT_SZ), jnp.float32)
    out = jax.block_until_ready(policy_forward(state, params))
    assert out.shape == (8, ACTION_SPACE)
    assert jnp.allclose(out, ref(state, params), atol=1e-4, rtol=1e-4)

    # Ragged batch exercising the wrapper-side padding path.
    state5 = jax.random.normal(jax.random.PRNGKey(1), (5, INPUT_SZ), jnp.float32)
    out5 = jax.block_until_ready(policy_forward(state5, params))
    assert out5.shape == (5, ACTION_SPACE)
    assert jnp.allclose(out5, ref(state5, params), atol=1e-4, rtol=1e-4)

    print("KERNEL_OK")
</pallas_src>

<mosaic_0001>
module attributes {stable_mosaic.version = 11 : i64} {
  func.func @policy_kernel(%arg0: i32, %arg1: memref<8x3xf32, #tpu.memory_space<vmem>>, %arg2: memref<3x256xf32, #tpu.memory_space<vmem>>, %arg3: memref<1x256xf32, #tpu.memory_space<vmem>>, %arg4: memref<256x256xf32, #tpu.memory_space<vmem>>, %arg5: memref<1x256xf32, #tpu.memory_space<vmem>>, %arg6: memref<1x256xf32, #tpu.memory_space<vmem>>, %arg7: memref<1x1xf32, #tpu.memory_space<smem>>, %arg8: memref<8x128xf32, #tpu.memory_space<vmem>>) attributes {dimension_semantics = [#tpu.dimension_semantics<parallel>], iteration_bounds = array<i64: 1>, scalar_prefetch = 0 : i64, scratch_operands = 0 : i64, tpu.core_type = #tpu.core_type<tc>, window_params = [{transform_indices = @transform_0, window_bounds = array<i64: 8, 3>}, {pipeline_mode = #tpu.pipeline_mode<synchronous>, transform_indices = @transform_1, window_bounds = array<i64: 3, 256>}, {pipeline_mode = #tpu.pipeline_mode<synchronous>, transform_indices = @transform_2, window_bounds = array<i64: 1, 256>}, {pipeline_mode = #tpu.pipeline_mode<synchronous>, transform_indices = @transform_3, window_bounds = array<i64: 256, 256>}, {pipeline_mode = #tpu.pipeline_mode<synchronous>, transform_indices = @transform_4, window_bounds = array<i64: 1, 256>}, {pipeline_mode = #tpu.pipeline_mode<synchronous>, transform_indices = @transform_5, window_bounds = array<i64: 1, 256>}, {transform_indices = @transform_6, window_bounds = array<i64: 1, 1>}, {transform_indices = @transform_7, window_bounds = array<i64: 8, 128>}]} {
    %c0 = arith.constant 0 : index
    %c0_0 = arith.constant 0 : index
    %0 = vector.load %arg1[%c0, %c0_0] : memref<8x3xf32, #tpu.memory_space<vmem>>, vector<8x3xf32>
    %c0_1 = arith.constant 0 : index
    %c0_2 = arith.constant 0 : index
    %1 = vector.load %arg2[%c0_1, %c0_2] : memref<3x256xf32, #tpu.memory_space<vmem>>, vector<3x256xf32>
    %2 = vector.extract_strided_slice %0 {offsets = [0, 0], sizes = [8, 1], strides = [1, 1]} : vector<8x3xf32> to vector<8x1xf32>
    %3 = vector.extract_strided_slice %1 {offsets = [0, 0], sizes = [1, 256], strides = [1, 1]} : vector<3x256xf32> to vector<1x256xf32>
    %4 = vector.broadcast %2 : vector<8x1xf32> to vector<8x256xf32>
    %5 = vector.broadcast %3 : vector<1x256xf32> to vector<8x256xf32>
    %6 = arith.mulf %4, %5 : vector<8x256xf32>
    %7 = vector.extract_strided_slice %0 {offsets = [0, 1], sizes = [8, 1], strides = [1, 1]} : vector<8x3xf32> to vector<8x1xf32>
    %8 = vector.extract_strided_slice %1 {offsets = [1, 0], sizes = [1, 256], strides = [1, 1]} : vector<3x256xf32> to vector<1x256xf32>
    %9 = vector.broadcast %7 : vector<8x1xf32> to vector<8x256xf32>
    %10 = vector.broadcast %8 : vector<1x256xf32> to vector<8x256xf32>
    %11 = arith.mulf %9, %10 : vector<8x256xf32>
    %12 = arith.addf %6, %11 : vector<8x256xf32>
    %13 = vector.extract_strided_slice %0 {offsets = [0, 2], sizes = [8, 1], strides = [1, 1]} : vector<8x3xf32> to vector<8x1xf32>
    %14 = vector.extract_strided_slice %1 {offsets = [2, 0], sizes = [1, 256], strides = [1, 1]} : vector<3x256xf32> to vector<1x256xf32>
    %15 = vector.broadcast %13 : vector<8x1xf32> to vector<8x256xf32>
    %16 = vector.broadcast %14 : vector<1x256xf32> to vector<8x256xf32>
    %17 = arith.mulf %15, %16 : vector<8x256xf32>
    %18 = arith.addf %12, %17 : vector<8x256xf32>
    %c0_3 = arith.constant 0 : index
    %c0_4 = arith.constant 0 : index
    %19 = vector.load %arg3[%c0_3, %c0_4] : memref<1x256xf32, #tpu.memory_space<vmem>>, vector<1x256xf32>
    %20 = vector.broadcast %19 : vector<1x256xf32> to vector<8x256xf32>
    %21 = arith.addf %18, %20 : vector<8x256xf32>
    %cst = arith.constant 0.000000e+00 : f32
    %22 = vector.broadcast %cst : f32 to vector<8x256xf32>
    %23 = arith.maximumf %21, %22 : vector<8x256xf32>
    %c0_5 = arith.constant 0 : index
    %c0_6 = arith.constant 0 : index
    %24 = vector.load %arg4[%c0_5, %c0_6] : memref<256x256xf32, #tpu.memory_space<vmem>>, vector<256x256xf32>
    %cst_7 = arith.constant dense<0.000000e+00> : vector<8x256xf32>
    %25 = tpu.matmul %23, %24, %cst_7 {dimension_numbers = #tpu.dot_dimension_numbers<[1], [0], [0], [1], [0, 0, 1, 1], [], []>} : vector<8x256xf32>, vector<256x256xf32>, vector<8x256xf32> -> vector<8x256xf32>
    %c0_8 = arith.constant 0 : index
    %c0_9 = arith.constant 0 : index
    %26 = vector.load %arg5[%c0_8, %c0_9] : memref<1x256xf32, #tpu.memory_space<vmem>>, vector<1x256xf32>
    %27 = vector.broadcast %26 : vector<1x256xf32> to vector<8x256xf32>
    %28 = arith.addf %25, %27 : vector<8x256xf32>
    %cst_10 = arith.constant 0.000000e+00 : f32
    %29 = vector.broadcast %cst_10 : f32 to vector<8x256xf32>
    %30 = arith.maximumf %28, %29 : vector<8x256xf32>
    %c0_11 = arith.constant 0 : index
    %c0_12 = arith.constant 0 : index
    %31 = vector.load %arg6[%c0_11, %c0_12] : memref<1x256xf32, #tpu.memory_space<vmem>>, vector<1x256xf32>
    %32 = vector.broadcast %31 : vector<1x256xf32> to vector<8x256xf32>
    %33 = arith.mulf %30, %32 : vector<8x256xf32>
    %cst_13 = arith.constant dense<0.000000e+00> : vector<8xf32>
    %34 = vector.multi_reduction <add>, %33, %cst_13 [1] : vector<8x256xf32> to vector<8xf32>
    %35 = vector.shape_cast %34 : vector<8xf32> to vector<8x1xf32>
    %c0_14 = arith.constant 0 : index
    %c0_15 = arith.constant 0 : index
    %36 = memref.load %arg7[%c0_14, %c0_15] : memref<1x1xf32, #tpu.memory_space<smem>>
    %37 = vector.broadcast %36 : f32 to vector<8x1xf32>
    %38 = arith.addf %35, %37 : vector<8x1xf32>
    %39 = math.tanh %38 : vector<8x1xf32>
    %cst_16 = arith.constant 2.000000e+00 : f32
    %40 = vector.broadcast %cst_16 : f32 to vector<8x1xf32>
    %41 = arith.mulf %39, %40 : vector<8x1xf32>
    %42 = vector.shape_cast %41 : vector<8x1xf32> to vector<8x1xf32>
    %43 = vector.broadcast %42 : vector<8x1xf32> to vector<8x128xf32>
    %c0_17 = arith.constant 0 : index
    %c0_18 = arith.constant 0 : index
    %44 = vector.load %arg8[%c0_17, %c0_18] : memref<8x128xf32, #tpu.memory_space<vmem>>, vector<8x128xf32>
    tpu.vector_store %arg8[%c0_17, %c0_18], %43 {strides = array<i32>} : memref<8x128xf32, #tpu.memory_space<vmem>>, vector<8x128xf32>,
    return
  }
  func.func @transform_0(%arg0: i32) -> (i32, i32) {
    %c0_i32 = arith.constant 0 : i32
    %c0_i32_0 = arith.constant 0 : i32
    return %arg0, %c0_i32 : i32, i32
  }
  func.func @transform_1(%arg0: i32) -> (i32, i32) {
    %c0_i32 = arith.constant 0 : i32
    %c0_i32_0 = arith.constant 0 : i32
    %c0_i32_1 = arith.constant 0 : i32
    return %c0_i32, %c0_i32_0 : i32, i32
  }
  func.func @transform_2(%arg0: i32) -> (i32, i32) {
    %c0_i32 = arith.constant 0 : i32
    %c0_i32_0 = arith.constant 0 : i32
    %c0_i32_1 = arith.constant 0 : i32
    return %c0_i32, %c0_i32_0 : i32, i32
  }
  func.func @transform_3(%arg0: i32) -> (i32, i32) {
    %c0_i32 = arith.constant 0 : i32
    %c0_i32_0 = arith.constant 0 : i32
    %c0_i32_1 = arith.constant 0 : i32
    return %c0_i32, %c0_i32_0 : i32, i32
  }
  func.func @transform_4(%arg0: i32) -> (i32, i32) {
    %c0_i32 = arith.constant 0 : i32
    %c0_i32_0 = arith.constant 0 : i32
    %c0_i32_1 = arith.constant 0 : i32
    return %c0_i32, %c0_i32_0 : i32, i32
  }
  func.func @transform_5(%arg0: i32) -> (i32, i32) {
    %c0_i32 = arith.constant 0 : i32
    %c0_i32_0 = arith.constant 0 : i32
    %c0_i32_1 = arith.constant 0 : i32
    return %c0_i32, %c0_i32_0 : i32, i32
  }
  func.func @transform_6(%arg0: i32) -> (i32, i32) {
    %c0_i32 = arith.constant 0 : i32
    %c0_i32_0 = arith.constant 0 : i32
    %c0_i32_1 = arith.constant 0 : i32
    return %c0_i32, %c0_i32_0 : i32, i32
  }
  func.func @transform_7(%arg0: i32) -> (i32, i32) {
    %c0_i32 = arith.constant 0 : i32
    %c0_i32_0 = arith.constant 0 : i32
    return %arg0, %c0_i32 : i32, i32
  }
}

</mosaic_0001>

<bundles_post_ra>
// kernel: tpu_custom_call.1
= control target key start
LH: loop header
LB: loop body
LE: loop exit
PB: predicated region body
PF: predicated region fallthrough
CT: control target
= control target key end

     0   :  { %13 = vsyncpa [#allocation4], 0  ;;  %s453_s0 = inlined_call_operand.vmem [shape: f32[8,3], index: 0, kind: input, shape index: {}]   ;;  %s454_s1 = inlined_call_operand.vmem [shape: f32[3,256], index: 1, kind: input, shape index: {}]   ;;  %s455_s2 = inlined_call_operand.vmem [shape: f32[1,256], index: 2, kind: input, shape index: {}]   ;;  %s456_s3 = inlined_call_operand.hbm [shape: f32[256,256], index: 3, kind: input, shape index: {}]   ;;  %s457_s4 = inlined_call_operand.vmem [shape: f32[1,256], index: 4, kind: input, shape index: {}]   ;;  %s458_s5 = inlined_call_operand.vmem [shape: f32[1,256], index: 5, kind: input, shape index: {}]   ;;  %s459_s6 = inlined_call_operand.<no memory space> [shape: f32[1,1], index: 6, kind: input, shape index: {}]   ;;  %s460_s7 = inlined_call_operand.hbm [shape: f32[8,128], index: 7, kind: output, shape index: {}]  }
   0x1   :  { %14 = vsyncpa [#allocation5], 0  ;;  %s382_s24 = smov [#allocation3]  }
   0x2   :  { %s26_s25 = sshll.u32 %s382_s24, 4  ;;  %s27_s25 = int_to_ptr.vmem [resolvable:$true] %s26_s25 }
   0x3   :  { %s346_s26 = scalar_lea.vmem %s27_s25, 8192  ;;  %p351_p1 = scmp.lt.s32.totalorder %s27_s25, %s27_s25 }
   0x4   :  { %p347_p0 = scmp.ne.s32.totalorder %s27_s25, %s346_s26  ;;  %p352_p2 = scmp.lt.s32.totalorder %s346_s26, %s346_s26 }
   0x6   :  { %p353_p3 = por %p352_p2, %p351_p1 }
   0x8   :  { %p354_p4 = pnand %p353_p3, %p347_p0 }
   0xa   :  { %357 = shalt.err (!%p354_p4)
}
   0xb   :  { %s383_s27 = smov 256   ;;  %s384_s28 = smov 16  }
   0xc   :  { %32 = dma.hbm_to_vmem [thread:$0]  %s456_s3, 8192, %s27_s25, [#allocation4], %s383_s27, %s383_s27, %s384_s28  }
   0xd   :  { %378 = dma.done.wait [#allocation4], 8192  }
   0xe   :  { %379 = vsyncadd [#allocation4], 4294959104  ;;  %v385_v0 = vmov 0   ;;  %v386_v1 = vmov 2   ;;  %v42_v2 = vld [vmem:[%s453_s0] sm:$0xff]  ;;  %v169_v3 = vld [vmem:[#allocation3 + $0xf8] sm:$0xff] }
   0xf   :  { %332 = vset.pattern.permute.xlu0 %v385_v0  ;;  %334 = vset.pattern.permute.xlu1 %v386_v1  ;;  %v168_v4 = vld [vmem:[#allocation3 + $0xf0] sm:$0xff]  ;;  %v167_v5 = vld [vmem:[#allocation3 + $0xe8] sm:$0xff]  ;;  %v166_v6 = vld [vmem:[#allocation3 + $0xe0] sm:$0xff]  ;;  %v387_v9 = vmov 1   ;;  %s388_s15 = smov [#allocation6]  }
  0x10   :  { %46 = vperm.xlu0 %332, %v42_v2   ;;  %97 = vperm.xlu1 %334, %v42_v2   ;;  %v165_v7 = vld [vmem:[#allocation3 + $0xd8] sm:$0xff]  ;;  %v164_v8 = vld [vmem:[#allocation3 + $0xd0] sm:$0xff]  ;;  %v163_v10 = vld [vmem:[#allocation3 + $0xc8] sm:$0xff] }
  0x11   :  { %214 = vmatprep.subr.mxu0 %v169_v3  ;;  %v162_v11 = vld [vmem:[#allocation3 + $0xc0] sm:$0xff]  ;;  %v161_v12 = vld [vmem:[#allocation3 + $0xb8] sm:$0xff]  ;;  %v160_v13 = vld [vmem:[#allocation3 + $0xb0] sm:$0xff] }
  0x12   :  { %215 = vmatpush1.msra.mxu0 %v168_v4  ;;  %v159_v14 = vld [vmem:[#allocation3 + $0xa8] sm:$0xff]  ;;  %v158_v15 = vld [vmem:[#allocation3 + $0xa0] sm:$0xff]  ;;  %v157_v16 = vld [vmem:[#allocation3 + $0x98] sm:$0xff]  ;;  %v50_v4 = vlaneseq }
  0x13   :  { %216 = vmatprep.subr.mxu0 %v167_v5  ;;  %v156_v17 = vld [vmem:[#allocation3 + $0x90] sm:$0xff]  ;;  %v155_v18 = vld [vmem:[#allocation3 + $0x88] sm:$0xff]  ;;  %v154_v19 = vld [vmem:[#allocation3 + $0x80] sm:$0xff] }
  0x14   :  { %333 = vset.pattern.permute.xlu0 %v387_v9  ;;  %217 = vmatpush1.msra.mxu0 %v166_v6  ;;  %v153_v20 = vld [vmem:[#allocation3 + $0x78] sm:$0xff]  ;;  %v152_v21 = vld [vmem:[#allocation3 + $0x70] sm:$0xff]  ;;  %v151_v22 = vld [vmem:[#allocation3 + $0x68] sm:$0xff]  ;;  %v51_v5 = vshrl.u32 %v50_v4, 7 }
  0x15   :  { %71 = vperm.xlu0 %333, %v42_v2   ;;  %218 = vmatprep.subr.mxu0 %v165_v7  ;;  %v150_v23 = vld [vmem:[#allocation3 + $0x60] sm:$0xff]  ;;  %v149_v24 = vld [vmem:[#allocation3 + $0x58] sm:$0xff]  ;;  %v148_v25 = vld [vmem:[#allocation3 + $0x50] sm:$0xff] }
  0x16   :  { %219 = vmatpush1.msra.mxu0 %v164_v8  ;;  %v147_v26 = vld [vmem:[#allocation3 + $0x48] sm:$0xff]  ;;  %v146_v27 = vld [vmem:[#allocation3 + $0x40] sm:$0xff]  ;;  %v145_v28 = vld [vmem:[#allocation3 + $0x38] sm:$0xff]  ;;  %v52_v6 = vsub.s32 0, %v51_v5  ;;  %v56_v7 = vsub.s32 4, %v51_v5  ;;  %v76_v9 = vsub.s32 1, %v51_v5 }
  0x17   :  { %220 = vmatprep.subr.mxu0 %v163_v10  ;;  %v144_v29 = vld [vmem:[#allocation3 + $0x30] sm:$0xff]  ;;  %v143_v30 = vld [vmem:[#allocation3 + $0x28] sm:$0xff]  ;;  %v142_v31 = vld [vmem:[#allocation3 + $0x20] sm:$0xff]  ;;  %v80_v10 = vsub.s32 5, %v51_v5 }
  0x18   :  { %221 = vmatpush1.msra.mxu0 %v162_v11  ;;  %v141_v32 = vld [vmem:[#allocation3 + $0x18] sm:$0xff]  ;;  %v140_v33 = vld [vmem:[#allocation3 + $0x10] sm:$0xff]  ;;  %v139_v34 = vld [vmem:[#allocation3 + $0x8] sm:$0xff]  ;;  %v102_v11 = vsub.s32 2, %v51_v5 }
  0x19   :  { %222 = vmatprep.subr.mxu0 %v161_v12  ;;  %335 = vset.pattern.permute.xlu0 %v386_v1  ;;  %v138_v35 = vld [vmem:[#allocation3] sm:$0xff]  ;;  %v201_v36 = vld [vmem:[#allocation3 + $0x1f8] sm:$0xff]  ;;  %v200_v37 = vld [vmem:[#allocation3 + $0x1f0] sm:$0xff]  ;;  %v106_v12 = vsub.s32 6, %v51_v5 }
  0x1a   :  { %223 = vmatpush1.msra.mxu0 %v160_v13  ;;  %v199_v38 = vld [vmem:[#allocation3 + $0x1e8] sm:$0xff]  ;;  %v198_v39 = vld [vmem:[#allocation3 + $0x1e0] sm:$0xff]  ;;  %v197_v40 = vld [vmem:[#allocation3 + $0x1d8] sm:$0xff] }
  0x1b   :  { %224 = vmatprep.subr.mxu0 %v159_v14  ;;  %v196_v41 = vld [vmem:[#allocation3 + $0x1d0] sm:$0xff]  ;;  %v195_v42 = vld [vmem:[#allocation3 + $0x1c8] sm:$0xff]  ;;  %v194_v43 = vld [vmem:[#allocation3 + $0x1c0] sm:$0xff] }
  0x1c   :  { %225 = vmatpush1.msra.mxu0 %v158_v15  ;;  %v193_v44 = vld [vmem:[#allocation3 + $0x1b8] sm:$0xff]  ;;  %v192_v45 = vld [vmem:[#allocation3 + $0x1b0] sm:$0xff]  ;;  %v191_v46 = vld [vmem:[#allocation3 + $0x1a8] sm:$0xff] }
  0x1d   :  { %226 = vmatprep.subr.mxu0 %v157_v16  ;;  %v190_v47 = vld [vmem:[#allocation3 + $0x1a0] sm:$0xff]  ;;  %v189_v48 = vld [vmem:[#allocation3 + $0x198] sm:$0xff]  ;;  %v188_v49 = vld [vmem:[#allocation3 + $0x190] sm:$0xff] }
  0x1e   :  { %227 = vmatpush1.msra.mxu0 %v156_v17  ;;  %v187_v50 = vld [vmem:[#allocation3 + $0x188] sm:$0xff]  ;;  %v186_v51 = vld [vmem:[#allocation3 + $0x180] sm:$0xff]  ;;  %v185_v52 = vld [vmem:[#allocation3 + $0x178] sm:$0xff] }
  0x1f   :  { %228 = vmatprep.subr.mxu0 %v155_v18  ;;  %v184_v53 = vld [vmem:[#allocation3 + $0x170] sm:$0xff]  ;;  %v183_v54 = vld [vmem:[#allocation3 + $0x168] sm:$0xff]  ;;  %v182_v55 = vld [vmem:[#allocation3 + $0x160] sm:$0xff] }
  0x20   :  { %229 = vmatpush1.msra.mxu0 %v154_v19  ;;  %v181_v56 = vld [vmem:[#allocation3 + $0x158] sm:$0xff]  ;;  %v180_v57 = vld [vmem:[#allocation3 + $0x150] sm:$0xff]  ;;  %v179_v58 = vld [vmem:[#allocation3 + $0x148] sm:$0xff] }
  0x21   :  { %230 = vmatprep.subr.mxu0 %v153_v20  ;;  %v178_v59 = vld [vmem:[#allocation3 + $0x140] sm:$0xff]  ;;  %v177_v60 = vld [vmem:[#allocation3 + $0x138] sm:$0xff]  ;;  %v176_v61 = vld [vmem:[#allocation3 + $0x130] sm:$0xff] }
  0x22   :  { %231 = vmatpush1.msra.mxu0 %v152_v21  ;;  %v175_v62 = vld [vmem:[#allocation3 + $0x128] sm:$0xff]  ;;  %v174_v63 = vld [vmem:[#allocation3 + $0x120] sm:$0xff]  ;;  %v173_v0 = vld [vmem:[#allocation3 + $0x118] sm:$0xff] }
  0x23   :  { %232 = vmatprep.subr.mxu0 %v151_v22  ;;  %v172_v1 = vld [vmem:[#allocation3 + $0x110] sm:$0xff]  ;;  %v171_v2 = vld [vmem:[#allocation3 + $0x108] sm:$0xff]  ;;  %v170_v3 = vld [vmem:[#allocation3 + $0x100] sm:$0xff] }
  0x24   :  { %233 = vmatpush1.msra.mxu0 %v150_v23  ;;  %v43_v8 = vld [vmem:[%s454_s1] sm:$0x77] }
  0x25   :  { %234 = vmatprep.subr.mxu0 %v149_v24  ;;  %v53_v13 = vrot.slane %v43_v8, %v52_v6  ;;  %v57_v14 = vrot.slane %v43_v8, %v56_v7  ;;  %v77_v15 = vrot.slane %v43_v8, %v76_v9  ;;  %v81_v16 = vrot.slane %v43_v8, %v80_v10 }
  0x26   :  { %235 = vmatpush1.msra.mxu0 %v148_v25  ;;  %v103_v17 = vrot.slane %v43_v8, %v102_v11  ;;  %v107_v18 = vrot.slane %v43_v8, %v106_v12 }
  0x27   :  { %236 = vmatprep.subr.mxu0 %v147_v26  ;;  %v63_v20 = vrot.slane %v53_v13, %v52_v6  ;;  %v67_v21 = vrot.slane %v57_v14, %v52_v6  ;;  %v87_v22 = vrot.slane %v77_v15, %v76_v9  ;;  %v91_v23 = vrot.slane %v81_v16, %v76_v9 }
  0x28   :  { %237 = vmatpush1.msra.mxu0 %v146_v27  ;;  %v113_v24 = vrot.slane %v103_v17, %v102_v11  ;;  %v117_v25 = vrot.slane %v107_v18, %v102_v11 }
  0x29   :  { %238 = vmatprep.subr.mxu0 %v145_v28 }
  0x2a   :  { %239 = vmatpush1.msra.mxu0 %v144_v29 }
  0x2b   :  { %240 = vmatprep.subr.mxu0 %v143_v30  ;;  %v122_v30 = vld [vmem:[%s455_s2] sm:$0x3] }
  0x2c   :  { %241 = vmatpush1.msra.mxu0 %v142_v31 }
  0x2d   :  { %242 = vmatprep.subr.mxu0 %v141_v32 }
  0x2e   :  { %243 = vmatpush1.msra.mxu0 %v140_v33 }
  0x2f   :  { %244 = vmatprep.subr.mxu0 %v139_v34 }
  0x30   :  { %245 = vmatpush1.msra.mxu0 %v138_v35 }
  0x31   :  { %246 = vmatprep.subr.mxu0 %v201_v36 }
  0x32   :  { %247 = vmatpush2.msra.mxu0 %v200_v37  ;;  %v127_v37 = vrot.slane %v122_v30, %v52_v6 }
  0x33   :  { %248 = vmatprep.subr.mxu0 %v199_v38  ;;  %v131_v38 = vrot.slane %v122_v30, %v76_v9 }
  0x34   :  { %249 = vmatpush2.msra.mxu0 %v198_v39 }
  0x35   :  { %250 = vmatprep.subr.mxu0 %v197_v40 }
  0x36   :  { %251 = vmatpush2.msra.mxu0 %v196_v41 }
  0x37   :  { %252 = vmatprep.subr.mxu0 %v195_v42 }
  0x38   :  { %253 = vmatpush2.msra.mxu0 %v194_v43 }
  0x39   :  { %254 = vmatprep.subr.mxu0 %v193_v44 }
  0x3a   :  { %255 = vmatpush2.msra.mxu0 %v192_v45  ;;  %v202_v45 = vld [vmem:[%s457_s4] sm:$0x3] }
  0x3b   :  { %256 = vmatprep.subr.mxu0 %v191_v46  ;;  %v207_v46 = vrot.slane %v202_v45, %v52_v6 }
  0x3c   :  { %257 = vmatpush2.msra.mxu0 %v190_v47  ;;  %v211_v47 = vrot.slane %v202_v45, %v76_v9 }
  0x3d   :  { %258 = vmatprep.subr.mxu0 %v189_v48 }
  0x3e   :  { %259 = vmatpush2.msra.mxu0 %v188_v49  ;;  %v287_v49 = vld [vmem:[%s458_s5] sm:$0x3]  ;;  %s316_s5 = sshll.u32 %s388_s15, 4  ;;  %s317_s5 = int_to_ptr.vmem [resolvable:$true] %s316_s5 }
  0x3f   :  { %260 = vmatprep.subr.mxu0 %v187_v50  ;;  %s358_s16 = scalar_lea.vmem %s317_s5, 128  ;;  %p363_p6 = scmp.lt.s32.totalorder %s317_s5, %s317_s5 }
  0x40   :  { %261 = vmatpush2.msra.mxu0 %v186_v51  ;;  %p359_p5 = scmp.ne.s32.totalorder %s317_s5, %s358_s16  ;;  %p364_p7 = scmp.lt.s32.totalorder %s358_s16, %s358_s16 }
  0x41   :  { %262 = vmatprep.subr.mxu0 %v185_v52 }
  0x42   :  { %263 = vmatpush2.msra.mxu0 %v184_v53  ;;  %v292_v53 = vrot.slane %v287_v49, %v52_v6  ;;  %p365_p8 = por %p364_p7, %p363_p6 }
  0x43   :  { %264 = vmatprep.subr.mxu0 %v183_v54 }
  0x44   :  { %265 = vmatpush2.msra.mxu0 %v182_v55  ;;  %v296_v55 = vrot.slane %v287_v49, %v76_v9  ;;  %p366_p9 = pnand %p365_p8, %p359_p5 }
  0x45   :  { %266 = vmatprep.subr.mxu0 %v181_v56 }
  0x46   :  { %267 = vmatpush2.msra.mxu0 %v180_v57 }
  0x47   :  { %268 = vmatprep.subr.mxu0 %v179_v58 }
  0x48   :  { %269 = vmatpush2.msra.mxu0 %v178_v59 }
  0x49   :  { %270 = vmatprep.subr.mxu0 %v177_v60  ;;  %v305_v60 = vstv %s459_s6 }
  0x4a   :  { %271 = vmatpush2.msra.mxu0 %v176_v61 }
  0x4b   :  { %272 = vmatprep.subr.mxu0 %v175_v62 }
  0x4c   :  { %273 = vmatpush2.msra.mxu0 %v174_v63 }
  0x4d   :  { %274 = vmatprep.subr.mxu0 %v173_v0 }
  0x4e   :  { %275 = vmatpush2.msra.mxu0 %v172_v1 }
  0x4f   :  { %276 = vmatprep.subr.mxu0 %v171_v2 }
  0x50   :  { %277 = vmatpush2.msra.mxu0 %v170_v3 }
  0x8b   :  { %v47_v19 = vpop.permute.xlu0 %46  ;;  %v98_v26 = vpop.permute.xlu1 %97 }
  0x8c   :  { %v68_v27 = vmul.f32 %v63_v20, %v47_v19  ;;  %v69_v28 = vmul.f32 %v67_v21, %v47_v19  ;;  %v118_v33 = vmul.f32 %v113_v24, %v98_v26  ;;  %v119_v34 = vmul.f32 %v117_v25, %v98_v26 }
  0x90   :  { %v72_v29 = vpop.permute.xlu0 %71 }
  0x91   :  { %v92_v31 = vmul.f32 %v87_v22, %v72_v29  ;;  %v93_v32 = vmul.f32 %v91_v23, %v72_v29 }
  0x93   :  { %v94_v35 = vadd.f32 %v92_v31, %v68_v27  ;;  %v95_v36 = vadd.f32 %v93_v32, %v69_v28 }
  0x95   :  { %v120_v39 = vadd.f32 %v118_v33, %v94_v35  ;;  %v121_v40 = vadd.f32 %v119_v34, %v95_v36 }
  0x97   :  { %v135_v41 = vadd.f32 %v131_v38, %v121_v40  ;;  %v134_v42 = vadd.f32 %v127_v37, %v120_v39 }
  0x99   :  { %v137_v43 = vmax.f32 %v135_v41, 0.0  ;;  %v136_v44 = vmax.f32 %v134_v42, 0.0 }
  0x9b   :  { %278 = vmatprep.mubr.f32.mxu0 %v137_v43 }
  0x9c   :  { %279 = vmatmul.mubr.f32.vlgmr.msra.gmra.mxu0 %v136_v44 }
 0x15c   :  { %v280_v48 = vpop.f32.mrf.mxu0 }
 0x15d   :  { %v281_v50 = vadd.f32 %v280_v48, %v207_v46 }
 0x15e   :  { %v282_v51 = vpop.f32.mrf.mxu0 }
 0x15f   :  { %v285_v52 = vmax.f32 %v281_v50, 0.0  ;;  %v283_v54 = vadd.f32 %v282_v51, %v211_v47 }
 0x161   :  { %v286_v56 = vmax.f32 %v283_v54, 0.0  ;;  %v299_v57 = vmul.f32 %v292_v53, %v285_v52 }
 0x163   :  { %v300_v58 = vmul.f32 %v296_v55, %v286_v56 }
 0x165   :  { %v301_v59 = vadd.f32 %v300_v58, %v299_v57 }
 0x167   :  { %302 = vadd.xlane.f32.xlu1 %v301_v59 }
 0x1f0   :  { %v303_v61 = vpop.xlane.xlu1 %302 }
 0x1f1   :  { %v306_v62 = vadd.f32 %v305_v60, %v303_v61 }
 0x1f3   :  { %336 = vtanh.f32 %v306_v62 }
 0x200   :  { %v337_v63 = vpop.eup %336 }
 0x201   :  { %v308_v0 = vmul.f32 2.0, %v337_v63 }
 0x203   :  { %309 = vst [vmem:[#allocation6] sm:$0xff] %v308_v0 }
 0x204   :  { %369 = shalt.err (!%p366_p9)
}
 0x205   :  { %319 = dma.vmem_to_hbm [thread:$0]  %s317_s5, 128, %s460_s7, [#allocation5]  }
 0x206   :  { %380 = dma.done.wait [#allocation5], 128  }
 0x207   :  { %381 = vsyncadd [#allocation5], 4294967168 }
 0x208   :  { %323 = vsyncpa [#allocation4], 1 }
 0x209   :  { %324 = vsyncpa [#allocation5], 1 }

</bundles_post_ra>
